<compile_context>
chip_gen: v5e
topology: v5e:2x2
jax: 0.10.0
libtpu: 0.0.40
codegen_flags: <defaults>
</compile_context>

<pallas_src>
import jax
import jax.numpy as jnp
from jax.experimental import pallas as pl
from jax.experimental.pallas import tpu as pltpu

EPS = 1e-5
LANE = 128
SUBLANE = 8
MAX_TILE_M2 = 2048          # rows per tile for the pure elementwise pass


def _round_up(x, m):
    return (x + m - 1) // m * m


def _vmem_limit_bytes():
    """Per-chip VMEM limit: generous on 128 MiB parts, conservative on v7x."""
    cap = 64 * 1024 * 1024
    try:  # trace-time hardware query; fall back to the conservative value
        cap = int(pltpu.get_tpu_info().vmem_capacity_bytes)
    except Exception:
        pass
    return max(32 * 1024 * 1024, min(cap * 3 // 4, 100 * 1024 * 1024))


VMEM_LIMIT = _vmem_limit_bytes()
KERNEL_BUDGET = VMEM_LIMIT - 8 * 1024 * 1024          # leave headroom for Mosaic scratch
MAX_TILE_M = 1024 if VMEM_LIMIT >= 80 * 1024 * 1024 else 512


# --------------------- pass 1: conv matmul + BN partial stats ---------------------

def _conv_stats_kernel(p_ref, w_ref, y_ref, stats_ref, acc_ref):
    # p_ref:     (TILE_M, TILE_K) bf16 im2col patches
    # w_ref:     (TILE_K, Cp)     bf16 weights (K-resident when num_k == 1)
    # y_ref:     (TILE_M, Cp)     bf16 conv output (written once, at the last k step)
    # stats_ref: (2, Cp)          f32 per-M-tile partial [sum ; sum of squares]
    # acc_ref:   (TILE_M, Cp)     f32 VMEM scratch accumulator
    k = pl.program_id(1)

    @pl.when(k == 0)
    def _():
        acc_ref[...] = jnp.zeros_like(acc_ref)

    acc_ref[...] += jnp.dot(p_ref[...], w_ref[...],
                            preferred_element_type=jnp.float32)

    @pl.when(k == pl.num_programs(1) - 1)
    def _():
        y = acc_ref[...]
        y_ref[...] = y.astype(y_ref.dtype)
        stats_ref[...] = jnp.concatenate(
            [jnp.sum(y, axis=0, keepdims=True),
             jnp.sum(y * y, axis=0, keepdims=True)], axis=0)


# --------------------- pass 2: fused BN affine + ReLU -----------------------------

def _bn_relu_kernel(y_ref, scale_ref, shift_ref, o_ref):
    y = y_ref[...].astype(jnp.float32)
    o_ref[...] = jnp.maximum(y * scale_ref[...] + shift_ref[...], 0.0).astype(o_ref.dtype)


# --------------------- tile selection ----------------------------------------------

def _pick_tile_m(m_rows):
    if m_rows <= SUBLANE:
        return SUBLANE
    # At least two M tiles so the "parallel" axis can shard across 2 TCs (v7x).
    half = _round_up(-(-m_rows // 2), SUBLANE)
    return min(MAX_TILE_M, half)


def _pick_tile_k(k128, tile_m, cp):
    """Largest TILE_K (multiple of 128, <= K128) fitting the per-layer VMEM budget."""
    def usage(tk):
        patches = 2 * tile_m * tk * 2      # bf16 input, double-buffered
        weights = 2 * tk * cp * 2          # bf16 input, double-buffered
        y_out = 2 * tile_m * cp * 2        # bf16 output, double-buffered
        stats = 2 * 2 * cp * 4
        acc = tile_m * cp * 4              # f32 scratch accumulator
        return patches + weights + y_out + stats + acc

    tk = k128
    while tk > LANE and usage(tk) > KERNEL_BUDGET:
        tk -= LANE
    return max(LANE, tk)


def _pick_tile_m2(tile_m, num_m):
    """Larger tiles for the HBM-bound elementwise pass, keeping >=2 grid steps."""
    best = 1
    for f in range(1, num_m + 1):
        if tile_m * f > MAX_TILE_M2:
            break
        if num_m % f:
            continue
        if num_m // f >= 2 or num_m == 1:
            best = f
    return tile_m * best, num_m // best


# --------------------- one conv(3x3, valid) + BN(train) + ReLU layer --------------

def _conv_bn_relu_nhwc(x_nhwc, w, gamma, beta, padding=0):
    """x_nhwc: (N, H, W, Cin) f32/bf16; w: (Cout, Cin, 3, 3) torch layout.
    Returns (N, H+2p-2, W+2p-2, Cout) bf16.  The conv bias is intentionally
    omitted: it cancels exactly inside training-mode BatchNorm."""
    if padding:
        x_nhwc = jnp.pad(x_nhwc, ((0, 0), (padding, padding), (padding, padding), (0, 0)))
    x_bf = x_nhwc.astype(jnp.bfloat16)                 # bf16-first: halves im2col traffic
    N, H, W, Cin = x_bf.shape
    Cout = w.shape[0]
    Ho, Wo = H - 2, W - 2
    M = N * Ho * Wo
    K = Cin * 9

    # im2col directly from NHWC, tap-major columns: col = (kh*3+kw)*Cin + cin.
    slabs = [x_bf[:, di:di + Ho, dj:dj + Wo, :].reshape(M, Cin)
             for di in range(3) for dj in range(3)]
    patches = jnp.concatenate(slabs, axis=1)           # (M, K) bf16

    # weight (Cout, Cin, 3, 3) -> rows ordered (kh, kw, cin) to match the patches.
    w_mat = jnp.transpose(w, (2, 3, 1, 0)).reshape(K, Cout).astype(jnp.bfloat16)

    # Lane-dense / tile-aligned padding.
    Cp = _round_up(Cout, LANE)
    TILE_M = _pick_tile_m(M)
    M_pad = _round_up(M, TILE_M)
    num_m = M_pad // TILE_M
    K128 = _round_up(K, LANE)
    TILE_K = _pick_tile_k(K128, TILE_M, Cp)            # K-resident (num_k == 1) if it fits
    num_k = -(-K128 // TILE_K)
    K_pad = num_k * TILE_K

    patches = jnp.pad(patches, ((0, M_pad - M), (0, K_pad - K)))
    w_mat = jnp.pad(w_mat, ((0, K_pad - K), (0, Cp - Cout)))

    # ---- pass 1: gridded MXU matmul (f32 VMEM acc) + per-tile BN statistics ----
    y, part_stats = pl.pallas_call(
        _conv_stats_kernel,
        grid=(num_m, num_k),
        in_specs=[
            pl.BlockSpec((TILE_M, TILE_K), lambda m, k: (m, k)),
            # index does not depend on m; with num_k == 1 the slab is fetched once.
            pl.BlockSpec((TILE_K, Cp), lambda m, k: (k, 0)),
        ],
        out_specs=(
            pl.BlockSpec((TILE_M, Cp), lambda m, k: (m, 0)),
            pl.BlockSpec((None, 2, Cp), lambda m, k: (m, 0, 0)),
        ),
        out_shape=(
            jax.ShapeDtypeStruct((M_pad, Cp), jnp.bfloat16),
            jax.ShapeDtypeStruct((num_m, 2, Cp), jnp.float32),
        ),
        scratch_shapes=[pltpu.VMEM((TILE_M, Cp), jnp.float32)],
        compiler_params=pltpu.CompilerParams(
            dimension_semantics=("parallel", "arbitrary"),
            vmem_limit_bytes=VMEM_LIMIT,
        ),
    )(patches, w_mat)

    # Finalize statistics (tiny (Cp,)-sized work) and fold into scale/shift.
    stats = jnp.sum(part_stats, axis=0)                            # (2, Cp)
    mean = stats[0] / float(M)                                     # true M (padded rows are 0)
    var = jnp.maximum(stats[1] / float(M) - mean * mean, 0.0)      # biased var, clamped
    inv_std = jax.lax.rsqrt(var + EPS)
    gamma_p = jnp.pad(gamma.astype(jnp.float32), (0, Cp - Cout))   # padded channels -> 0
    beta_p = jnp.pad(beta.astype(jnp.float32), (0, Cp - Cout))
    scale = (gamma_p * inv_std).reshape(1, Cp)
    shift = (beta_p - mean * gamma_p * inv_std).reshape(1, Cp)

    # ---- pass 2: fused normalize + affine + ReLU, in place over y, larger tiles ----
    TILE_M2, num_m2 = _pick_tile_m2(TILE_M, num_m)
    act = pl.pallas_call(
        _bn_relu_kernel,
        grid=(num_m2,),
        in_specs=[
            pl.BlockSpec((TILE_M2, Cp), lambda m: (m, 0)),
            pl.BlockSpec((1, Cp), lambda m: (0, 0)),
            pl.BlockSpec((1, Cp), lambda m: (0, 0)),
        ],
        out_specs=pl.BlockSpec((TILE_M2, Cp), lambda m: (m, 0)),
        out_shape=jax.ShapeDtypeStruct((M_pad, Cp), jnp.bfloat16),
        input_output_aliases={0: 0},                   # overwrite y in place
        compiler_params=pltpu.CompilerParams(
            dimension_semantics=("parallel",),
            vmem_limit_bytes=VMEM_LIMIT,
        ),
    )(y, scale, shift)

    return act[:M, :Cout].reshape(N, Ho, Wo, Cout)     # bf16; cast at module boundary


# --------------------- module forward (NCHW boundary, NHWC inside) ----------------

def conv_relu_block_ln_forward(x_nchw, params, output_activation_state=False, padding=0):
    """x: (N, Cin, H, W) f32 -> (N, Cout, H-4, W-4) f32 (padding=0)."""
    x = jnp.transpose(x_nchw, (0, 2, 3, 1))            # NHWC once
    a1 = _conv_bn_relu_nhwc(x, params["w1"], params["gamma1"], params["beta1"], padding)
    a2 = _conv_bn_relu_nhwc(a1, params["w2"], params["gamma2"], params["beta2"], padding)
    a2_nchw = jnp.transpose(a2, (0, 3, 1, 2)).astype(jnp.float32)
    if output_activation_state:
        return a2_nchw, jnp.transpose(a1, (0, 3, 1, 2)).astype(jnp.float32)
    return a2_nchw


def init_params(key, in_channels, out_channels):
    k1, k2, k3, k4 = jax.random.split(key, 4)
    # Conv biases kept for interface parity; they cancel under training-mode BN.
    return {
        "w1": jax.random.normal(k1, (out_channels, in_channels, 3, 3), jnp.float32) * 0.1,
        "b1": jax.random.normal(k2, (out_channels,), jnp.float32) * 0.1,
        "gamma1": jnp.ones((out_channels,), jnp.float32),
        "beta1": jnp.zeros((out_channels,), jnp.float32),
        "w2": jax.random.normal(k3, (out_channels, out_channels, 3, 3), jnp.float32) * 0.1,
        "b2": jax.random.normal(k4, (out_channels,), jnp.float32) * 0.1,
        "gamma2": jnp.ones((out_channels,), jnp.float32),
        "beta2": jnp.zeros((out_channels,), jnp.float32),
    }


# --------------------- pure-XLA reference (test only) -----------------------------

def _reference(x, params):
    def layer(x, w, b, g, bt):
        y = jax.lax.conv_general_dilated(
            x, w, (1, 1), "VALID", dimension_numbers=("NCHW", "OIHW", "NCHW"))
        y = y + b.reshape(1, -1, 1, 1)
        mean = y.mean(axis=(0, 2, 3), keepdims=True)
        var = ((y - mean) ** 2).mean(axis=(0, 2, 3), keepdims=True)
        y = (y - mean) * jax.lax.rsqrt(var + EPS) * g.reshape(1, -1, 1, 1) + bt.reshape(1, -1, 1, 1)
        return jnp.maximum(y, 0.0)

    a1 = layer(x, params["w1"], params["b1"], params["gamma1"], params["beta1"])
    a2 = layer(a1, params["w2"], params["b2"], params["gamma2"], params["beta2"])
    return a2, a1


if __name__ == "__main__":
    key = jax.random.PRNGKey(0)
    kx, kp = jax.random.split(key)

    N, Cin, Cout, H, W = 2, 4, 8, 16, 16
    x = jax.random.normal(kx, (N, Cin, H, W), jnp.float32)
    params = init_params(kp, Cin, Cout)

    fwd = jax.jit(lambda xx, pp: conv_relu_block_ln_forward(xx, pp, output_activation_state=True))
    out, act1 = fwd(x, params)
    out = jax.block_until_ready(out)
    act1 = jax.block_until_ready(act1)

    assert out.shape == (N, Cout, H - 4, W - 4), out.shape
    assert act1.shape == (N, Cout, H - 2, W - 2), act1.shape

    # Loose-tolerance numeric check vs the f32 XLA reference (bf16 MXU + bf16 y path).
    ref_out, ref_act1 = _reference(x, params)
    err = max(float(jnp.max(jnp.abs(out - ref_out))),
              float(jnp.max(jnp.abs(act1 - ref_act1))))
    assert err < 0.2, f"max abs error vs reference too large: {err}"

    print("KERNEL_OK")
</pallas_src>

<mosaic_0001>
module attributes {stable_mosaic.version = 11 : i64} {
  func.func @_conv_stats_kernel(%arg0: i32, %arg1: i32, %arg2: memref<200x128xbf16, #tpu.memory_space<vmem>>, %arg3: memref<128x128xbf16, #tpu.memory_space<vmem>>, %arg4: memref<200x128xbf16, #tpu.memory_space<vmem>>, %arg5: memref<1x2x128xf32, #tpu.memory_space<vmem>>, %arg6: memref<200x128xf32, #tpu.memory_space<vmem>>) attributes {dimension_semantics = [#tpu.dimension_semantics<parallel>, #tpu.dimension_semantics<arbitrary>], iteration_bounds = array<i64: 2, 1>, scalar_prefetch = 0 : i64, scratch_operands = 1 : i64, tpu.core_type = #tpu.core_type<tc>, window_params = [{transform_indices = @transform_0, window_bounds = array<i64: 200, 128>}, {transform_indices = @transform_1, window_bounds = array<i64: 128, 128>}, {transform_indices = @transform_2, window_bounds = array<i64: 200, 128>}, {transform_indices = @transform_3, window_bounds = array<i64: 1, 2, 128>}]} {
    %c0_i32 = arith.constant 0 : i32
    %0 = arith.cmpi eq, %arg1, %c0_i32 : i32
    %1 = arith.extui %0 : i1 to i32
    %c0_i32_0 = arith.constant 0 : i32
    %2 = arith.cmpi ne, %1, %c0_i32_0 : i32
    scf.if %2 {
      %cst_10 = arith.constant 0.000000e+00 : f32
      %12 = vector.broadcast %cst_10 : f32 to vector<200x128xf32>
      %c0_11 = arith.constant 0 : index
      %c0_12 = arith.constant 0 : index
      %13 = vector.load %arg6[%c0_11, %c0_12] : memref<200x128xf32, #tpu.memory_space<vmem>>, vector<200x128xf32>
      tpu.vector_store %arg6[%c0_11, %c0_12], %12 {strides = array<i32>} : memref<200x128xf32, #tpu.memory_space<vmem>>, vector<200x128xf32>,
    } else {
    }
    %c0 = arith.constant 0 : index
    %c0_1 = arith.constant 0 : index
    %3 = vector.load %arg6[%c0, %c0_1] : memref<200x128xf32, #tpu.memory_space<vmem>>, vector<200x128xf32>
    %c0_2 = arith.constant 0 : index
    %c0_3 = arith.constant 0 : index
    %4 = vector.load %arg2[%c0_2, %c0_3] : memref<200x128xbf16, #tpu.memory_space<vmem>>, vector<200x128xbf16>
    %c0_4 = arith.constant 0 : index
    %c0_5 = arith.constant 0 : index
    %5 = vector.load %arg3[%c0_4, %c0_5] : memref<128x128xbf16, #tpu.memory_space<vmem>>, vector<128x128xbf16>
    %cst = arith.constant dense<0.000000e+00> : vector<200x128xf32>
    %6 = tpu.matmul %4, %5, %cst {dimension_numbers = #tpu.dot_dimension_numbers<[1], [0], [0], [1], [0, 0, 1, 1], [], []>} : vector<200x128xbf16>, vector<128x128xbf16>, vector<200x128xf32> -> vector<200x128xf32>
    %7 = arith.addf %3, %6 : vector<200x128xf32>
    %c0_6 = arith.constant 0 : index
    %c0_7 = arith.constant 0 : index
    %8 = vector.load %arg6[%c0_6, %c0_7] : memref<200x128xf32, #tpu.memory_space<vmem>>, vector<200x128xf32>
    tpu.vector_store %arg6[%c0_6, %c0_7], %7 {strides = array<i32>} : memref<200x128xf32, #tpu.memory_space<vmem>>, vector<200x128xf32>,
    %c0_i32_8 = arith.constant 0 : i32
    %9 = arith.cmpi eq, %arg1, %c0_i32_8 : i32
    %10 = arith.extui %9 : i1 to i32
    %c0_i32_9 = arith.constant 0 : i32
    %11 = arith.cmpi ne, %10, %c0_i32_9 : i32
    scf.if %11 {
      %c0_10 = arith.constant 0 : index
      %c0_11 = arith.constant 0 : index
      %12 = vector.load %arg6[%c0_10, %c0_11] : memref<200x128xf32, #tpu.memory_space<vmem>>, vector<200x128xf32>
      %13 = arith.truncf %12 : vector<200x128xf32> to vector<200x128xbf16>
      %c0_12 = arith.constant 0 : index
      %c0_13 = arith.constant 0 : index
      %14 = vector.load %arg4[%c0_12, %c0_13] : memref<200x128xbf16, #tpu.memory_space<vmem>>, vector<200x128xbf16>
      tpu.vector_store %arg4[%c0_12, %c0_13], %13 {strides = array<i32>} : memref<200x128xbf16, #tpu.memory_space<vmem>>, vector<200x128xbf16>,
      %cst_14 = arith.constant dense<0.000000e+00> : vector<128xf32>
      %15 = vector.multi_reduction <add>, %12, %cst_14 [0] : vector<200x128xf32> to vector<128xf32>
      %16 = vector.shape_cast %15 : vector<128xf32> to vector<1x128xf32>
      %17 = arith.mulf %12, %12 : vector<200x128xf32>
      %cst_15 = arith.constant dense<0.000000e+00> : vector<128xf32>
      %18 = vector.multi_reduction <add>, %17, %cst_15 [0] : vector<200x128xf32> to vector<128xf32>
      %19 = vector.shape_cast %18 : vector<128xf32> to vector<1x128xf32>
      %20 = tpu.concatenate %16, %19 in 0 : vector<1x128xf32>, vector<1x128xf32> -> vector<2x128xf32>
      %c0_16 = arith.constant 0 : index
      %c0_17 = arith.constant 0 : index
      %c0_18 = arith.constant 0 : index
      %21 = vector.load %arg5[%c0_16, %c0_17, %c0_18] : memref<1x2x128xf32, #tpu.memory_space<vmem>>, vector<1x2x128xf32>
      %22 = vector.shape_cast %21 : vector<1x2x128xf32> to vector<2x128xf32>
      %23 = vector.shape_cast %20 : vector<2x128xf32> to vector<1x2x128xf32>
      tpu.vector_store %arg5[%c0_16, %c0_17, %c0_18], %23 {strides = array<i32>} : memref<1x2x128xf32, #tpu.memory_space<vmem>>, vector<1x2x128xf32>,
    } else {
    }
    return
  }
  func.func @transform_0(%arg0: i32, %arg1: i32) -> (i32, i32) {
    %c0_i32 = arith.constant 0 : i32
    return %arg0, %arg1 : i32, i32
  }
  func.func @transform_1(%arg0: i32, %arg1: i32) -> (i32, i32) {
    %c0_i32 = arith.constant 0 : i32
    %c0_i32_0 = arith.constant 0 : i32
    return %arg1, %c0_i32 : i32, i32
  }
  func.func @transform_2(%arg0: i32, %arg1: i32) -> (i32, i32) {
    %c0_i32 = arith.constant 0 : i32
    %c0_i32_0 = arith.constant 0 : i32
    return %arg0, %c0_i32 : i32, i32
  }
  func.func @transform_3(%arg0: i32, %arg1: i32) -> (i32, i32, i32) {
    %c0_i32 = arith.constant 0 : i32
    %c0_i32_0 = arith.constant 0 : i32
    %c0_i32_1 = arith.constant 0 : i32
    return %arg0, %c0_i32, %c0_i32_0 : i32, i32, i32
  }
}

module attributes {stable_mosaic.version = 11 : i64} {
  func.func @_bn_relu_kernel(%arg0: i32, %arg1: memref<200x128xbf16, #tpu.memory_space<vmem>>, %arg2: memref<1x128xf32, #tpu.memory_space<vmem>>, %arg3: memref<1x128xf32, #tpu.memory_space<vmem>>, %arg4: memref<200x128xbf16, #tpu.memory_space<vmem>>) attributes {dimension_semantics = [#tpu.dimension_semantics<parallel>], iteration_bounds = array<i64: 2>, scalar_prefetch = 0 : i64, scratch_operands = 0 : i64, tpu.core_type = #tpu.core_type<tc>, window_params = [{transform_indices = @transform_0, window_bounds = array<i64: 200, 128>}, {pipeline_mode = #tpu.pipeline_mode<synchronous>, transform_indices = @transform_1, window_bounds = array<i64: 1, 128>}, {pipeline_mode = #tpu.pipeline_mode<synchronous>, transform_indices = @transform_2, window_bounds = array<i64: 1, 128>}, {transform_indices = @transform_3, window_bounds = array<i64: 200, 128>}]} {
    %c0 = arith.constant 0 : index
    %c0_0 = arith.constant 0 : index
    %0 = vector.load %arg1[%c0, %c0_0] : memref<200x128xbf16, #tpu.memory_space<vmem>>, vector<200x128xbf16>
    %1 = arith.extf %0 : vector<200x128xbf16> to vector<200x128xf32>
    %c0_1 = arith.constant 0 : index
    %c0_2 = arith.constant 0 : index
    %2 = vector.load %arg2[%c0_1, %c0_2] : memref<1x128xf32, #tpu.memory_space<vmem>>, vector<1x128xf32>
    %3 = vector.broadcast %2 : vector<1x128xf32> to vector<200x128xf32>
    %4 = arith.mulf %1, %3 : vector<200x128xf32>
    %c0_3 = arith.constant 0 : index
    %c0_4 = arith.constant 0 : index
    %5 = vector.load %arg3[%c0_3, %c0_4] : memref<1x128xf32, #tpu.memory_space<vmem>>, vector<1x128xf32>
    %6 = vector.broadcast %5 : vector<1x128xf32> to vector<200x128xf32>
    %7 = arith.addf %4, %6 : vector<200x128xf32>
    %cst = arith.constant 0.000000e+00 : f32
    %8 = vector.broadcast %cst : f32 to vector<200x128xf32>
    %9 = arith.maximumf %7, %8 : vector<200x128xf32>
    %10 = arith.truncf %9 : vector<200x128xf32> to vector<200x128xbf16>
    %c0_5 = arith.constant 0 : index
    %c0_6 = arith.constant 0 : index
    %11 = vector.load %arg4[%c0_5, %c0_6] : memref<200x128xbf16, #tpu.memory_space<vmem>>, vector<200x128xbf16>
    tpu.vector_store %arg4[%c0_5, %c0_6], %10 {strides = array<i32>} : memref<200x128xbf16, #tpu.memory_space<vmem>>, vector<200x128xbf16>,
    return
  }
  func.func @transform_0(%arg0: i32) -> (i32, i32) {
    %c0_i32 = arith.constant 0 : i32
    %c0_i32_0 = arith.constant 0 : i32
    return %arg0, %c0_i32 : i32, i32
  }
  func.func @transform_1(%arg0: i32) -> (i32, i32) {
    %c0_i32 = arith.constant 0 : i32
    %c0_i32_0 = arith.constant 0 : i32
    %c0_i32_1 = arith.constant 0 : i32
    return %c0_i32, %c0_i32_0 : i32, i32
  }
  func.func @transform_2(%arg0: i32) -> (i32, i32) {
    %c0_i32 = arith.constant 0 : i32
    %c0_i32_0 = arith.constant 0 : i32
    %c0_i32_1 = arith.constant 0 : i32
    return %c0_i32, %c0_i32_0 : i32, i32
  }
  func.func @transform_3(%arg0: i32) -> (i32, i32) {
    %c0_i32 = arith.constant 0 : i32
    %c0_i32_0 = arith.constant 0 : i32
    return %arg0, %c0_i32 : i32, i32
  }
}

module attributes {stable_mosaic.version = 11 : i64} {
  func.func @_conv_stats_kernel(%arg0: i32, %arg1: i32, %arg2: memref<144x128xbf16, #tpu.memory_space<vmem>>, %arg3: memref<128x128xbf16, #tpu.memory_space<vmem>>, %arg4: memref<144x128xbf16, #tpu.memory_space<vmem>>, %arg5: memref<1x2x128xf32, #tpu.memory_space<vmem>>, %arg6: memref<144x128xf32, #tpu.memory_space<vmem>>) attributes {dimension_semantics = [#tpu.dimension_semantics<parallel>, #tpu.dimension_semantics<arbitrary>], iteration_bounds = array<i64: 2, 1>, scalar_prefetch = 0 : i64, scratch_operands = 1 : i64, tpu.core_type = #tpu.core_type<tc>, window_params = [{transform_indices = @transform_0, window_bounds = array<i64: 144, 128>}, {transform_indices = @transform_1, window_bounds = array<i64: 128, 128>}, {transform_indices = @transform_2, window_bounds = array<i64: 144, 128>}, {transform_indices = @transform_3, window_bounds = array<i64: 1, 2, 128>}]} {
    %c0_i32 = arith.constant 0 : i32
    %0 = arith.cmpi eq, %arg1, %c0_i32 : i32
    %1 = arith.extui %0 : i1 to i32
    %c0_i32_0 = arith.constant 0 : i32
    %2 = arith.cmpi ne, %1, %c0_i32_0 : i32
    scf.if %2 {
      %cst_10 = arith.constant 0.000000e+00 : f32
      %12 = vector.broadcast %cst_10 : f32 to vector<144x128xf32>
      %c0_11 = arith.constant 0 : index
      %c0_12 = arith.constant 0 : index
      %13 = vector.load %arg6[%c0_11, %c0_12] : memref<144x128xf32, #tpu.memory_space<vmem>>, vector<144x128xf32>
      tpu.vector_store %arg6[%c0_11, %c0_12], %12 {strides = array<i32>} : memref<144x128xf32, #tpu.memory_space<vmem>>, vector<144x128xf32>,
    } else {
    }
    %c0 = arith.constant 0 : index
    %c0_1 = arith.constant 0 : index
    %3 = vector.load %arg6[%c0, %c0_1] : memref<144x128xf32, #tpu.memory_space<vmem>>, vector<144x128xf32>
    %c0_2 = arith.constant 0 : index
    %c0_3 = arith.constant 0 : index
    %4 = vector.load %arg2[%c0_2, %c0_3] : memref<144x128xbf16, #tpu.memory_space<vmem>>, vector<144x128xbf16>
    %c0_4 = arith.constant 0 : index
    %c0_5 = arith.constant 0 : index
    %5 = vector.load %arg3[%c0_4, %c0_5] : memref<128x128xbf16, #tpu.memory_space<vmem>>, vector<128x128xbf16>
    %cst = arith.constant dense<0.000000e+00> : vector<144x128xf32>
    %6 = tpu.matmul %4, %5, %cst {dimension_numbers = #tpu.dot_dimension_numbers<[1], [0], [0], [1], [0, 0, 1, 1], [], []>} : vector<144x128xbf16>, vector<128x128xbf16>, vector<144x128xf32> -> vector<144x128xf32>
    %7 = arith.addf %3, %6 : vector<144x128xf32>
    %c0_6 = arith.constant 0 : index
    %c0_7 = arith.constant 0 : index
    %8 = vector.load %arg6[%c0_6, %c0_7] : memref<144x128xf32, #tpu.memory_space<vmem>>, vector<144x128xf32>
    tpu.vector_store %arg6[%c0_6, %c0_7], %7 {strides = array<i32>} : memref<144x128xf32, #tpu.memory_space<vmem>>, vector<144x128xf32>,
    %c0_i32_8 = arith.constant 0 : i32
    %9 = arith.cmpi eq, %arg1, %c0_i32_8 : i32
    %10 = arith.extui %9 : i1 to i32
    %c0_i32_9 = arith.constant 0 : i32
    %11 = arith.cmpi ne, %10, %c0_i32_9 : i32
    scf.if %11 {
      %c0_10 = arith.constant 0 : index
      %c0_11 = arith.constant 0 : index
      %12 = vector.load %arg6[%c0_10, %c0_11] : memref<144x128xf32, #tpu.memory_space<vmem>>, vector<144x128xf32>
      %13 = arith.truncf %12 : vector<144x128xf32> to vector<144x128xbf16>
      %c0_12 = arith.constant 0 : index
      %c0_13 = arith.constant 0 : index
      %14 = vector.load %arg4[%c0_12, %c0_13] : memref<144x128xbf16, #tpu.memory_space<vmem>>, vector<144x128xbf16>
      tpu.vector_store %arg4[%c0_12, %c0_13], %13 {strides = array<i32>} : memref<144x128xbf16, #tpu.memory_space<vmem>>, vector<144x128xbf16>,
      %cst_14 = arith.constant dense<0.000000e+00> : vector<128xf32>
      %15 = vector.multi_reduction <add>, %12, %cst_14 [0] : vector<144x128xf32> to vector<128xf32>
      %16 = vector.shape_cast %15 : vector<128xf32> to vector<1x128xf32>
      %17 = arith.mulf %12, %12 : vector<144x128xf32>
      %cst_15 = arith.constant dense<0.000000e+00> : vector<128xf32>
      %18 = vector.multi_reduction <add>, %17, %cst_15 [0] : vector<144x128xf32> to vector<128xf32>
      %19 = vector.shape_cast %18 : vector<128xf32> to vector<1x128xf32>
      %20 = tpu.concatenate %16, %19 in 0 : vector<1x128xf32>, vector<1x128xf32> -> vector<2x128xf32>
      %c0_16 = arith.constant 0 : index
      %c0_17 = arith.constant 0 : index
      %c0_18 = arith.constant 0 : index
      %21 = vector.load %arg5[%c0_16, %c0_17, %c0_18] : memref<1x2x128xf32, #tpu.memory_space<vmem>>, vector<1x2x128xf32>
      %22 = vector.shape_cast %21 : vector<1x2x128xf32> to vector<2x128xf32>
      %23 = vector.shape_cast %20 : vector<2x128xf32> to vector<1x2x128xf32>
      tpu.vector_store %arg5[%c0_16, %c0_17, %c0_18], %23 {strides = array<i32>} : memref<1x2x128xf32, #tpu.memory_space<vmem>>, vector<1x2x128xf32>,
    } else {
    }
    return
  }
  func.func @transform_0(%arg0: i32, %arg1: i32) -> (i32, i32) {
    %c0_i32 = arith.constant 0 : i32
    return %arg0, %arg1 : i32, i32
  }
  func.func @transform_1(%arg0: i32, %arg1: i32) -> (i32, i32) {
    %c0_i32 = arith.constant 0 : i32
    %c0_i32_0 = arith.constant 0 : i32
    return %arg1, %c0_i32 : i32, i32
  }
  func.func @transform_2(%arg0: i32, %arg1: i32) -> (i32, i32) {
    %c0_i32 = arith.constant 0 : i32
    %c0_i32_0 = arith.constant 0 : i32
    return %arg0, %c0_i32 : i32, i32
  }
  func.func @transform_3(%arg0: i32, %arg1: i32) -> (i32, i32, i32) {
    %c0_i32 = arith.constant 0 : i32
    %c0_i32_0 = arith.constant 0 : i32
    %c0_i32_1 = arith.constant 0 : i32
    return %arg0, %c0_i32, %c0_i32_0 : i32, i32, i32
  }
}

module attributes {stable_mosaic.version = 11 : i64} {
  func.func @_bn_relu_kernel(%arg0: i32, %arg1: memref<144x128xbf16, #tpu.memory_space<vmem>>, %arg2: memref<1x128xf32, #tpu.memory_space<vmem>>, %arg3: memref<1x128xf32, #tpu.memory_space<vmem>>, %arg4: memref<144x128xbf16, #tpu.memory_space<vmem>>) attributes {dimension_semantics = [#tpu.dimension_semantics<parallel>], iteration_bounds = array<i64: 2>, scalar_prefetch = 0 : i64, scratch_operands = 0 : i64, tpu.core_type = #tpu.core_type<tc>, window_params = [{transform_indices = @transform_0, window_bounds = array<i64: 144, 128>}, {pipeline_mode = #tpu.pipeline_mode<synchronous>, transform_indices = @transform_1, window_bounds = array<i64: 1, 128>}, {pipeline_mode = #tpu.pipeline_mode<synchronous>, transform_indices = @transform_2, window_bounds = array<i64: 1, 128>}, {transform_indices = @transform_3, window_bounds = array<i64: 144, 128>}]} {
    %c0 = arith.constant 0 : index
    %c0_0 = arith.constant 0 : index
    %0 = vector.load %arg1[%c0, %c0_0] : memref<144x128xbf16, #tpu.memory_space<vmem>>, vector<144x128xbf16>
    %1 = arith.extf %0 : vector<144x128xbf16> to vector<144x128xf32>
    %c0_1 = arith.constant 0 : index
    %c0_2 = arith.constant 0 : index
    %2 = vector.load %arg2[%c0_1, %c0_2] : memref<1x128xf32, #tpu.memory_space<vmem>>, vector<1x128xf32>
    %3 = vector.broadcast %2 : vector<1x128xf32> to vector<144x128xf32>
    %4 = arith.mulf %1, %3 : vector<144x128xf32>
    %c0_3 = arith.constant 0 : index
    %c0_4 = arith.constant 0 : index
    %5 = vector.load %arg3[%c0_3, %c0_4] : memref<1x128xf32, #tpu.memory_space<vmem>>, vector<1x128xf32>
    %6 = vector.broadcast %5 : vector<1x128xf32> to vector<144x128xf32>
    %7 = arith.addf %4, %6 : vector<144x128xf32>
    %cst = arith.constant 0.000000e+00 : f32
    %8 = vector.broadcast %cst : f32 to vector<144x128xf32>
    %9 = arith.maximumf %7, %8 : vector<144x128xf32>
    %10 = arith.truncf %9 : vector<144x128xf32> to vector<144x128xbf16>
    %c0_5 = arith.constant 0 : index
    %c0_6 = arith.constant 0 : index
    %11 = vector.load %arg4[%c0_5, %c0_6] : memref<144x128xbf16, #tpu.memory_space<vmem>>, vector<144x128xbf16>
    tpu.vector_store %arg4[%c0_5, %c0_6], %10 {strides = array<i32>} : memref<144x128xbf16, #tpu.memory_space<vmem>>, vector<144x128xbf16>,
    return
  }
  func.func @transform_0(%arg0: i32) -> (i32, i32) {
    %c0_i32 = arith.constant 0 : i32
    %c0_i32_0 = arith.constant 0 : i32
    return %arg0, %c0_i32 : i32, i32
  }
  func.func @transform_1(%arg0: i32) -> (i32, i32) {
    %c0_i32 = arith.constant 0 : i32
    %c0_i32_0 = arith.constant 0 : i32
    %c0_i32_1 = arith.constant 0 : i32
    return %c0_i32, %c0_i32_0 : i32, i32
  }
  func.func @transform_2(%arg0: i32) -> (i32, i32) {
    %c0_i32 = arith.constant 0 : i32
    %c0_i32_0 = arith.constant 0 : i32
    %c0_i32_1 = arith.constant 0 : i32
    return %c0_i32, %c0_i32_0 : i32, i32
  }
  func.func @transform_3(%arg0: i32) -> (i32, i32) {
    %c0_i32 = arith.constant 0 : i32
    %c0_i32_0 = arith.constant 0 : i32
    return %arg0, %c0_i32 : i32, i32
  }
}

</mosaic_0001>

<bundles_post_ra>
// kernel: _lambda_.5
= control target key start
LH: loop header
LB: loop body
LE: loop exit
PB: predicated region body
PF: predicated region fallthrough
CT: control target
= control target key end

     0   :  { %s590_s12 = smov 0   ;;  %s668_s0 = inlined_call_operand.vmem [shape: bf16[400,128], index: 0, kind: input, shape index: {}, may-alias: {0,3}]   ;;  %s669_s1 = inlined_call_operand.vmem [shape: f32[1,128], index: 1, kind: input, shape index: {}]   ;;  %s670_s2 = inlined_call_operand.vmem [shape: f32[1,128], index: 2, kind: input, shape index: {}]   ;;  %s671_s3 = inlined_call_operand.vmem [shape: bf16[400,128], index: 3, kind: output, shape index: {}, may-alias: {0,3}]  }
   0x1 LB: > { %s413_s13 = sadd.s32 4294967295, %s568_s12   ;;  %p417_p0 = scmp.ge.s32.totalorder %s568_s12, 1  ;;  %s568_s12 = sphi %s590_s12, %s13_s12  }
   0x2   : > { %p138_p1 = scmp.lt.s32.totalorder %s568_s12, 3 }
   0x4   : > { %p139_p2 = pnand %p417_p0, %p138_p1 }
   0x5   : > { %s162_s14 = smul.u32 (!%p139_p2), 25, %s413_s13 }
   0x6   : > { %142 = sbr.rel (%p139_p2) target bundleno = 48 (0x30), region = 32 }
   0x7   : > { %p163_p3 = scmp.lt.s32.totalorder (!%p139_p2), %s162_s14, 49 }
   0xb   : > { %s673_s14 = smov (!%p163_p3, %s162_s14), 49  ;;  %v560_v10 = vld [vmem:[%s669_s1] ss:$0 sm:$0xff] }
   0xc   : > { %s418_s15 = sshll.u32 %s673_s14, 2  ;;  %v612_v50 = vld [vmem:[%s670_s2] ss:$0 sm:$0xff] }
   0xd   : > { %s166_s18 = scalar_lea.vmem %s668_s0, %s418_s15  ;;  %s631_s25 = scalar_lea.vmem %s671_s3, %s418_s15 }
   0xe   : > { %v423_v0 = vld [vmem:[%s166_s18] sm:$0xff]   ;;  %v530_v1 = vld [vmem:[%s166_s18 + $0x8] sm:$0xff]   ;;  %v531_v2 = vld [vmem:[%s166_s18 + $0x10] sm:$0xff]  }
   0xf   : > { %v424_v3 = vunpack.c.l.bf16 %v423_v0  ;;  %v425_v4 = vunpack.c.h.bf16 %v423_v0  ;;  %v428_v5 = vunpack.c.l.bf16 %v530_v1  ;;  %v429_v6 = vunpack.c.h.bf16 %v530_v1  ;;  %v532_v7 = vld [vmem:[%s166_s18 + $0x18] sm:$0xff]   ;;  %v533_v8 = vld [vmem:[%s166_s18 + $0x20] sm:$0xff]   ;;  %v534_v9 = vld [vmem:[%s166_s18 + $0x28] sm:$0xff]  }
  0x10   : > { %v432_v11 = vunpack.c.l.bf16 %v531_v2  ;;  %v433_v12 = vunpack.c.h.bf16 %v531_v2  ;;  %v436_v13 = vunpack.c.l.bf16 %v532_v7  ;;  %v437_v14 = vunpack.c.h.bf16 %v532_v7  ;;  %v535_v15 = vld [vmem:[%s166_s18 + $0x30] sm:$0xff]   ;;  %v536_v16 = vld [vmem:[%s166_s18 + $0x38] sm:$0xff]   ;;  %v537_v17 = vld [vmem:[%s166_s18 + $0x40] sm:$0xff]  }
  0x11   : > { %v440_v18 = vunpack.c.l.bf16 %v533_v8  ;;  %v441_v19 = vunpack.c.h.bf16 %v533_v8  ;;  %v444_v20 = vunpack.c.l.bf16 %v534_v9  ;;  %v445_v21 = vunpack.c.h.bf16 %v534_v9  ;;  %v538_v22 = vld [vmem:[%s166_s18 + $0x48] sm:$0xff]   ;;  %v539_v23 = vld [vmem:[%s166_s18 + $0x50] sm:$0xff]   ;;  %v540_v24 = vld [vmem:[%s166_s18 + $0x58] sm:$0xff]  }
  0x12   : > { %v448_v25 = vunpack.c.l.bf16 %v535_v15  ;;  %v449_v26 = vunpack.c.h.bf16 %v535_v15  ;;  %v452_v27 = vunpack.c.l.bf16 %v536_v16  ;;  %v453_v28 = vunpack.c.h.bf16 %v536_v16  ;;  %v198_v29 = vld [vmem:[%s166_s18 + $0x60] sm:$0xf] }
  0x13   : > { %v456_v30 = vunpack.c.l.bf16 %v537_v17  ;;  %v457_v31 = vunpack.c.h.bf16 %v537_v17  ;;  %v460_v32 = vunpack.c.l.bf16 %v538_v22  ;;  %v461_v33 = vunpack.c.h.bf16 %v538_v22 }
  0x14   : > { %v464_v34 = vunpack.c.l.bf16 %v539_v23  ;;  %v465_v35 = vunpack.c.h.bf16 %v539_v23  ;;  %v468_v36 = vunpack.c.l.bf16 %v540_v24  ;;  %v469_v37 = vunpack.c.h.bf16 %v540_v24 }
  0x15   : > { %v223_v38 = vunpack.c.l.bf16 %v198_v29  ;;  %v228_v39 = vmul.f32 %v560_v10, %v424_v3  ;;  %v229_v40 = vmul.f32 %v560_v10, %v425_v4  ;;  %v230_v41 = vmul.f32 %v560_v10, %v428_v5 }
  0x16   : > { %v231_v42 = vmul.f32 %v560_v10, %v429_v6  ;;  %v232_v43 = vmul.f32 %v560_v10, %v432_v11  ;;  %v233_v44 = vmul.f32 %v560_v10, %v433_v12  ;;  %v234_v45 = vmul.f32 %v560_v10, %v436_v13 }
  0x17   : > { %v235_v46 = vmul.f32 %v560_v10, %v437_v14  ;;  %v236_v47 = vmul.f32 %v560_v10, %v440_v18  ;;  %v237_v48 = vmul.f32 %v560_v10, %v441_v19  ;;  %v238_v49 = vmul.f32 %v560_v10, %v444_v20 }
  0x18   : > { %v239_v51 = vmul.f32 %v560_v10, %v445_v21  ;;  %v240_v52 = vmul.f32 %v560_v10, %v448_v25  ;;  %v241_v53 = vmul.f32 %v560_v10, %v449_v26  ;;  %v242_v54 = vmul.f32 %v560_v10, %v452_v27 }
  0x19   : > { %v243_v55 = vmul.f32 %v560_v10, %v453_v28  ;;  %v244_v56 = vmul.f32 %v560_v10, %v456_v30  ;;  %v245_v57 = vmul.f32 %v560_v10, %v457_v31  ;;  %v246_v58 = vmul.f32 %v560_v10, %v460_v32 }
  0x1a   : > { %v247_v59 = vmul.f32 %v560_v10, %v461_v33  ;;  %v248_v60 = vmul.f32 %v560_v10, %v464_v34  ;;  %v249_v61 = vmul.f32 %v560_v10, %v465_v35  ;;  %v614_v62 = vmul.f32 %v560_v10, %v468_v36 }
  0x1b   : > { %v616_v63 = vmul.f32 %v560_v10, %v469_v37  ;;  %v252_v0 = vmul.f32 %v560_v10, %v223_v38  ;;  %v257_v1 = vadd.f32 %v612_v50, %v228_v39  ;;  %v258_v2 = vadd.f32 %v612_v50, %v229_v40 }
  0x1c   : > { %v259_v3 = vadd.f32 %v612_v50, %v230_v41  ;;  %v260_v4 = vadd.f32 %v612_v50, %v231_v42  ;;  %v261_v5 = vadd.f32 %v612_v50, %v232_v43  ;;  %v262_v6 = vadd.f32 %v612_v50, %v233_v44 }
  0x1d   : > { %v281_v7 = vadd.f32 %v612_v50, %v252_v0  ;;  %v282_v8 = vmax.f32 %v257_v1, 0.0  ;;  %v283_v9 = vmax.f32 %v258_v2, 0.0  ;;  %v263_v11 = vadd.f32 %v612_v50, %v234_v45 }
  0x1e   : > { %v284_v10 = vmax.f32 %v259_v3, 0.0  ;;  %v285_v12 = vmax.f32 %v260_v4, 0.0  ;;  %v286_v13 = vmax.f32 %v261_v5, 0.0  ;;  %v287_v14 = vmax.f32 %v262_v6, 0.0 }
  0x1f   : > { %v306_v15 = vmax.f32 %v281_v7, 0.0  ;;  %v473_v16 = vpack.c.bf16 %v283_v9, %v282_v8  ;;  %v264_v17 = vadd.f32 %v612_v50, %v235_v46  ;;  %v288_v18 = vmax.f32 %v263_v11, 0.0 }
  0x20   : > { %v478_v19 = vpack.c.bf16 %v285_v12, %v284_v10  ;;  %v483_v20 = vpack.c.bf16 %v287_v14, %v286_v13  ;;  %v265_v21 = vadd.f32 %v612_v50, %v236_v47  ;;  %v266_v22 = vadd.f32 %v612_v50, %v237_v48 }
  0x21   : > { %v331_v23 = vpack.c.bf16 %v306_v15, %v306_v15  ;;  %474 = vst [vmem:[%s631_s25] sm:$0xff] %v473_v16   ;;  %v289_v24 = vmax.f32 %v264_v17, 0.0  ;;  %v267_v25 = vadd.f32 %v612_v50, %v238_v49  ;;  %v268_v26 = vadd.f32 %v612_v50, %v239_v51 }
  0x22   : > { %541 = vst [vmem:[%s631_s25 + $0x8] sm:$0xff] %v478_v19   ;;  %v290_v27 = vmax.f32 %v265_v21, 0.0  ;;  %v291_v28 = vmax.f32 %v266_v22, 0.0  ;;  %v269_v29 = vadd.f32 %v612_v50, %v240_v52  ;;  %v270_v30 = vadd.f32 %v612_v50, %v241_v53 }
  0x23   : > { %356 = vst [vmem:[%s631_s25 + $0x60] sm:$0xf] %v331_v23  ;;  %v488_v31 = vpack.c.bf16 %v289_v24, %v288_v18  ;;  %v292_v32 = vmax.f32 %v267_v25, 0.0  ;;  %v293_v33 = vmax.f32 %v268_v26, 0.0  ;;  %v271_v34 = vadd.f32 %v612_v50, %v242_v54 }
  0x24   : > { %542 = vst [vmem:[%s631_s25 + $0x10] sm:$0xff] %v483_v20   ;;  %v493_v35 = vpack.c.bf16 %v291_v28, %v290_v27  ;;  %v294_v36 = vmax.f32 %v269_v29, 0.0  ;;  %v295_v37 = vmax.f32 %v270_v30, 0.0  ;;  %v272_v38 = vadd.f32 %v612_v50, %v243_v55 }
  0x25   : > { %543 = vst [vmem:[%s631_s25 + $0x18] sm:$0xff] %v488_v31   ;;  %v498_v39 = vpack.c.bf16 %v293_v33, %v292_v32  ;;  %v296_v40 = vmax.f32 %v271_v34, 0.0  ;;  %v273_v41 = vadd.f32 %v612_v50, %v244_v56  ;;  %v274_v42 = vadd.f32 %v612_v50, %v245_v57 }
  0x26   : > { %544 = vst [vmem:[%s631_s25 + $0x20] sm:$0xff] %v493_v35   ;;  %v503_v43 = vpack.c.bf16 %v295_v37, %v294_v36  ;;  %v297_v44 = vmax.f32 %v272_v38, 0.0  ;;  %v275_v45 = vadd.f32 %v612_v50, %v246_v58  ;;  %v276_v46 = vadd.f32 %v612_v50, %v247_v59 }
  0x27   : > { %545 = vst [vmem:[%s631_s25 + $0x28] sm:$0xff] %v498_v39   ;;  %v298_v47 = vmax.f32 %v273_v41, 0.0  ;;  %v299_v48 = vmax.f32 %v274_v42, 0.0  ;;  %v277_v49 = vadd.f32 %v612_v50, %v248_v60  ;;  %v278_v51 = vadd.f32 %v612_v50, %v249_v61 }
  0x28   : > { %546 = vst [vmem:[%s631_s25 + $0x30] sm:$0xff] %v503_v43   ;;  %v508_v52 = vpack.c.bf16 %v297_v44, %v296_v40  ;;  %v300_v53 = vmax.f32 %v275_v45, 0.0  ;;  %v301_v54 = vmax.f32 %v276_v46, 0.0  ;;  %v279_v55 = vadd.f32 %v612_v50, %v614_v62 }
  0x29   : > { %v513_v56 = vpack.c.bf16 %v299_v48, %v298_v47  ;;  %v302_v57 = vmax.f32 %v277_v49, 0.0  ;;  %v303_v58 = vmax.f32 %v278_v51, 0.0  ;;  %v280_v59 = vadd.f32 %v612_v50, %v616_v63 }
  0x2a   : > { %547 = vst [vmem:[%s631_s25 + $0x38] sm:$0xff] %v508_v52   ;;  %v518_v60 = vpack.c.bf16 %v301_v54, %v300_v53  ;;  %v304_v0 = vmax.f32 %v279_v55, 0.0 }
  0x2b   : > { %548 = vst [vmem:[%s631_s25 + $0x40] sm:$0xff] %v513_v56   ;;  %v523_v61 = vpack.c.bf16 %v303_v58, %v302_v57  ;;  %v305_v1 = vmax.f32 %v280_v59, 0.0 }
  0x2c   : > { %549 = vst [vmem:[%s631_s25 + $0x48] sm:$0xff] %v518_v60  }
  0x2d   : > { %550 = vst [vmem:[%s631_s25 + $0x50] sm:$0xff] %v523_v61   ;;  %v528_v2 = vpack.c.bf16 %v305_v1, %v304_v0 }
  0x2f   : > { %551 = vst [vmem:[%s631_s25 + $0x58] sm:$0xff] %v528_v2  }
  0x30 PF: > { %s13_s12 = sadd.s32 1, %s568_s12  }
  0x31   : > { %p10_p4 = scmp.ge.s32.totalorder %s13_s12, 4  }
  0x33   :  { %12 = sbr.rel (!%p10_p4) target bundleno = 1 (0x1), region = 62 }

// kernel: _lambda_.4
= control target key start
LH: loop header
LB: loop body
LE: loop exit
PB: predicated region body
PF: predicated region fallthrough
CT: control target
= control target key end

     0   :  { %s1126_s12 = smov 0   ;;  %s1128_s13 = smov 0   ;;  %s1283_s0 = inlined_call_operand.vmem [shape: bf16[400,128], index: 0, kind: input, shape index: {}]   ;;  %s1284_s1 = inlined_call_operand.vmem [shape: bf16[128,128], index: 1, kind: input, shape index: {}]   ;;  %s1285_s2 = inlined_call_operand.vmem [shape: bf16[400,128], index: 2, kind: output, shape index: {0}]   ;;  %s1286_s3 = inlined_call_operand.vmem [shape: f32[2,2,128], index: 3, kind: output, shape index: {1}]  }
   0x1   :  { %s1130_s14 = smov 0  }
   0x2 LB: > { %s26_s15 = sadd.s32 1, %s1100_s13  ;;  %p857_p0 = scmp.ge.s32.totalorder %s1104_s14, 1  ;;  %s1104_s14 = sphi %s1130_s14, %s14_s14   ;;  %s1100_s13 = sphi %s1128_s13, %s1288_s13   ;;  %s1096_s12 = sphi %s1126_s12, %s1287_s12  }
   0x3   : > { %p28_p1 = scmp.ge.s32.totalorder %s26_s15, 2  ;;  %p169_p2 = scmp.lt.s32.totalorder %s1104_s14, 3 }
   0x5   : > { %s1290_s15 = smov (%p28_p1, %s26_s15), 0  ;;  %p170_p3 = pnand %p857_p0, %p169_p2 }
   0x6   : > { %s205_s24 = smul.u32 (!%p170_p3), 25, %s1096_s12  ;;  %p226_p5 = scmp.lt.s32.totalorder (!%p170_p3), %s1096_s12, 1 }
   0x7   : > { %173 = sbr.rel (%p170_p3) target bundleno = 266 (0x10a), region = 28 }
   0x8   : > { %p206_p4 = scmp.lt.s32.totalorder (!%p170_p3), %s205_s24, 49 }
   0xc   : > { %v962_v0 = vld [vmem:[%s1284_s1 + $0x38] sm:$0xff]  ;;  %v961_v1 = vld [vmem:[%s1284_s1 + $0x30] sm:$0xff]  ;;  %v960_v2 = vld [vmem:[%s1284_s1 + $0x28] sm:$0xff]  ;;  %s1292_s24 = smov (!%p206_p4, %s205_s24), 49  ;;  %s1294_s12 = smov (!%p226_p5, %s1096_s12), 1  ;;  %vm735_vm0 = vcmask 1040384  }
   0xd   : > { %449 = vmatpush.bf16.msra.mxu0 %v962_v0  ;;  %1035 = vmatpush.bf16.msra.mxu2 %v962_v0  ;;  %v959_v3 = vld [vmem:[%s1284_s1 + $0x20] sm:$0xff]  ;;  %v958_v4 = vld [vmem:[%s1284_s1 + $0x18] sm:$0xff]  ;;  %v957_v5 = vld [vmem:[%s1284_s1 + $0x10] sm:$0xff]  ;;  %s858_s4 = sshll.u32 %s1292_s24, 2  ;;  %s860_s17 = sshll.u32 %s1294_s12, 1 }
   0xe   : > { %1034 = vmatpush.bf16.msra.mxu1 %v962_v0  ;;  %1036 = vmatpush.bf16.msra.mxu3 %v962_v0  ;;  %v956_v6 = vld [vmem:[%s1284_s1 + $0x8] sm:$0xff]  ;;  %v955_v7 = vld [vmem:[%s1284_s1] sm:$0xff]  ;;  %s1179_s9 = scalar_lea.vmem %s1283_s0, %s858_s4  ;;  %s1203_s16 = scalar_lea.vmem %s1285_s2, %s858_s4 }
   0xf   : > { %v943_v8 = vld [vmem:[%s1179_s9] sm:$0xff]  ;;  %v949_v9 = vld [vmem:[%s1179_s9 + $0x30] sm:$0xff]  ;;  %v946_v10 = vld [vmem:[%s1179_s9 + $0x18] sm:$0xff]  ;;  %s229_s20 = scalar_lea.vmem %s1286_s3, %s860_s17 }
  0x10   : > { %v953_v11 = vld [vmem:[%s1179_s9 + $0x50] sm:$0xff]  ;;  %v944_v12 = vld [vmem:[%s1179_s9 + $0x8] sm:$0xff]  ;;  %v950_v13 = vld [vmem:[%s1179_s9 + $0x38] sm:$0xff] }
  0x11   : > { %450 = vmatpush.bf16.msra.mxu0 %v961_v1  ;;  %1038 = vmatpush.bf16.msra.mxu2 %v961_v1  ;;  %v947_v14 = vld [vmem:[%s1179_s9 + $0x20] sm:$0xff]  ;;  %v954_v15 = vld [vmem:[%s1179_s9 + $0x58] sm:$0xff]  ;;  %v945_v18 = vld [vmem:[%s1179_s9 + $0x10] sm:$0xff] }
  0x12   : > { %1037 = vmatpush.bf16.msra.mxu1 %v961_v1  ;;  %1039 = vmatpush.bf16.msra.mxu3 %v961_v1  ;;  %v308_v16 = vld [vmem:[%s1179_s9 + $0x60] sm:$0xf]  ;;  %v948_v20 = vld [vmem:[%s1179_s9 + $0x28] sm:$0xff] }
  0x13   : > { %v374_v17 = vunpack.c.l.b16 %v308_v16  ;;  %v951_v19 = vld [vmem:[%s1179_s9 + $0x40] sm:$0xff]  ;;  %v952_v22 = vld [vmem:[%s1179_s9 + $0x48] sm:$0xff] }
  0x15   : > { %451 = vmatpush.bf16.msra.mxu0 %v960_v2  ;;  %1041 = vmatpush.bf16.msra.mxu2 %v960_v2  ;;  %v387_v21 = vpack.c.b16 %v374_v17, %v374_v17 }
  0x16   : > { %1040 = vmatpush.bf16.msra.mxu1 %v960_v2  ;;  %1042 = vmatpush.bf16.msra.mxu3 %v960_v2 }
  0x19   : > { %452 = vmatpush.bf16.msra.mxu0 %v959_v3  ;;  %1044 = vmatpush.bf16.msra.mxu2 %v959_v3 }
  0x1a   : > { %1043 = vmatpush.bf16.msra.mxu1 %v959_v3  ;;  %1045 = vmatpush.bf16.msra.mxu3 %v959_v3 }
  0x1d   : > { %453 = vmatpush.bf16.msra.mxu0 %v958_v4  ;;  %1047 = vmatpush.bf16.msra.mxu2 %v958_v4 }
  0x1e   : > { %1046 = vmatpush.bf16.msra.mxu1 %v958_v4  ;;  %1048 = vmatpush.bf16.msra.mxu3 %v958_v4 }
  0x21   : > { %454 = vmatpush.bf16.msra.mxu0 %v957_v5  ;;  %1050 = vmatpush.bf16.msra.mxu2 %v957_v5 }
  0x22   : > { %1049 = vmatpush.bf16.msra.mxu1 %v957_v5  ;;  %1051 = vmatpush.bf16.msra.mxu3 %v957_v5 }
  0x25   : > { %455 = vmatpush.bf16.msra.mxu0 %v956_v6  ;;  %1053 = vmatpush.bf16.msra.mxu2 %v956_v6 }
  0x26   : > { %1052 = vmatpush.bf16.msra.mxu1 %v956_v6  ;;  %1054 = vmatpush.bf16.msra.mxu3 %v956_v6 }
  0x29   : > { %456 = vmatpush.bf16.msra.mxu0 %v955_v7  ;;  %1056 = vmatpush.bf16.msra.mxu2 %v955_v7 }
  0x2a   : > { %1055 = vmatpush.bf16.msra.mxu1 %v955_v7  ;;  %1057 = vmatpush.bf16.msra.mxu3 %v955_v7 }
  0x2c   : > { %457 = vmatmul.bf16.vlgmr.msra.gmra.mxu0 %v943_v8  ;;  %487 = vmatmul.bf16.vlgmr.msra.gmra.mxu2 %v949_v9 }
  0x2d   : > { %472 = vmatmul.bf16.vlgmr.msra.gmra.mxu1 %v946_v10  ;;  %507 = vmatmul.bf16.vlgmr.msra.gmra.mxu3 %v953_v11 }
  0x3c   : > { %462 = vmatmul.bf16.gmra.mxu0 %v944_v12  ;;  %492 = vmatmul.bf16.gmra.mxu2 %v950_v13 }
  0x3d   : > { %477 = vmatmul.bf16.gmra.mxu1 %v947_v14  ;;  %512 = vmatmul.bf16.gmra.mxu3 %v954_v15 }
  0x4c   : > { %467 = vmatmul.bf16.gmra.mxu0 %v945_v18  ;;  %497 = vmatmul.bf16.gmra.mxu2 %v951_v19 }
  0x4d   : > { %482 = vmatmul.bf16.gmra.mxu1 %v948_v20  ;;  %517 = vmatmul.bf16.gmra.mxu3 %v387_v21 }
  0x5c   : > { %502 = vmatmul.bf16.gmra.mxu2 %v952_v22 }
  0xa9   : > { %v458_v23 = vpop.f32.mrf.mxu0 }
  0xaa   : > { %v473_v24 = vpop.f32.mrf.mxu1  ;;  %v680_v49 = vmul.f32 %v458_v23, %v458_v23 }
  0xab   : > { %v686_v6 = vmul.f32 %v473_v24, %v473_v24 }
  0xaf   : > { %v1194_v25 = vpop.f32.mrf.mxu2 }
  0xb0   : > { %v1196_v26 = vpop.f32.mrf.mxu3 }
  0xb1   : > { %v460_v27 = vpop.f32.mrf.mxu0 }
  0xb2   : > { %v966_v28 = vpack.c.bf16 %v460_v27, %v458_v23  ;;  %v475_v29 = vpop.f32.mrf.mxu1  ;;  %v681_v44 = vmul.f32 %v460_v27, %v460_v27  ;;  %v650_v50 = vadd.f32 %v460_v27, %v458_v23 }
  0xb3   : > { %v981_v30 = vpack.c.bf16 %v475_v29, %v473_v24  ;;  %v687_v9 = vmul.f32 %v475_v29, %v475_v29 }
  0xb4   : > { %967 = vst [vmem:[%s1203_s16] sm:$0xff] %v966_v28   ;;  %v705_v53 = vadd.f32 %v681_v44, %v680_v49 }
  0xb5   : > { %1025 = vst [vmem:[%s1203_s16 + $0x18] sm:$0xff] %v981_v30  }
  0xb7   : > { %v1207_v31 = vpop.f32.mrf.mxu2 }
  0xb8   : > { %v996_v32 = vpack.c.bf16 %v1207_v31, %v1194_v25  ;;  %v1211_v33 = vpop.f32.mrf.mxu3 }
  0xb9   : > { %v463_v34 = vpop.f32.mrf.mxu0  ;;  %v1016_v35 = vpack.c.bf16 %v1211_v33, %v1196_v26 }
  0xba   : > { %1028 = vst [vmem:[%s1203_s16 + $0x30] sm:$0xff] %v996_v32   ;;  %v478_v36 = vpop.f32.mrf.mxu1  ;;  %v682_v51 = vmul.f32 %v463_v34, %v463_v34  ;;  %v651_v54 = vadd.f32 %v650_v50, %v463_v34  ;;  %v692_v32 = vmul.f32 %v1194_v25, %v1194_v25 }
  0xbb   : > { %1032 = vst [vmem:[%s1203_s16 + $0x50] sm:$0xff] %v1016_v35   ;;  %v688_v13 = vmul.f32 %v478_v36, %v478_v36 }
  0xbc   : > { %v706_v56 = vadd.f32 %v705_v53, %v682_v51 }
  0xbf   : > { %v1217_v37 = vpop.f32.mrf.mxu2 }
  0xc0   : > { %v1219_v38 = vpop.f32.mrf.mxu3 }
  0xc1   : > { %v465_v39 = vpop.f32.mrf.mxu0 }
  0xc2   : > { %v971_v40 = vpack.c.bf16 %v465_v39, %v463_v34  ;;  %v480_v41 = vpop.f32.mrf.mxu1  ;;  %v683_v55 = vmul.f32 %v465_v39, %v465_v39  ;;  %v652_v57 = vadd.f32 %v651_v54, %v465_v39 }
  0xc3   : > { %v986_v42 = vpack.c.bf16 %v480_v41, %v478_v36  ;;  %v689_v19 = vmul.f32 %v480_v41, %v480_v41 }
  0xc4   : > { %1023 = vst [vmem:[%s1203_s16 + $0x8] sm:$0xff] %v971_v40   ;;  %v707_v60 = vadd.f32 %v706_v56, %v683_v55 }
  0xc5   : > { %1026 = vst [vmem:[%s1203_s16 + $0x20] sm:$0xff] %v986_v42  }
  0xc7   : > { %v1223_v43 = vpop.f32.mrf.mxu2 }
  0xc8   : > { %v1001_v45 = vpack.c.bf16 %v1223_v43, %v1217_v37  ;;  %v1227_v46 = vpop.f32.mrf.mxu3 }
  0xc9   : > { %v468_v47 = vpop.f32.mrf.mxu0  ;;  %v1021_v48 = vpack.c.bf16 %v1227_v46, %v1219_v38 }
  0xca   : > { %1029 = vst [vmem:[%s1203_s16 + $0x38] sm:$0xff] %v1001_v45   ;;  %v483_v52 = vpop.f32.mrf.mxu1  ;;  %v684_v58 = vmul.f32 %v468_v47, %v468_v47  ;;  %v653_v61 = vadd.f32 %v652_v57, %v468_v47  ;;  %v695_v45 = vmul.f32 %v1223_v43, %v1223_v43 }
  0xcb   : > { %1033 = vst [vmem:[%s1203_s16 + $0x58] sm:$0xff] %v1021_v48   ;;  %v690_v22 = vmul.f32 %v483_v52, %v483_v52 }
  0xcc   : > { %v708_v0 = vadd.f32 %v707_v60, %v684_v58 }
  0xcf   : > { %v498_v59 = vpop.f32.mrf.mxu2 }
  0xd0   : > { %v1233_v62 = vpop.f32.mrf.mxu3  ;;  %v696_v49 = vmul.f32 %v498_v59, %v498_v59 }
  0xd1   : > { %v470_v63 = vpop.f32.mrf.mxu0  ;;  %v624_v18 = vpack.c.bf16 %v1233_v62, %v1233_v62 }
  0xd2   : > { %v976_v1 = vpack.c.bf16 %v470_v63, %v468_v47  ;;  %v654_v2 = vadd.f32 %v653_v61, %v470_v63  ;;  %v685_v3 = vmul.f32 %v470_v63, %v470_v63  ;;  %v485_v4 = vpop.f32.mrf.mxu1  ;;  %v700_v61 = vmul.f32 %v1196_v26, %v1196_v26 }
  0xd3   : > { %v991_v5 = vpack.c.bf16 %v485_v4, %v483_v52  ;;  %649 = vst [vmem:[%s1203_s16 + $0x60] sm:$0xf] %v624_v18  ;;  %v691_v28 = vmul.f32 %v485_v4, %v485_v4 }
  0xd4   : > { %1024 = vst [vmem:[%s1203_s16 + $0x10] sm:$0xff] %v976_v1   ;;  %v655_v7 = vadd.f32 %v654_v2, %v473_v24  ;;  %v709_v8 = vadd.f32 %v708_v0, %v685_v3  ;;  %v702_v2 = vmul.f32 %v1219_v38, %v1219_v38 }
  0xd5   : > { %1027 = vst [vmem:[%s1203_s16 + $0x28] sm:$0xff] %v991_v5  }
  0xd6   : > { %v656_v10 = vadd.f32 %v655_v7, %v475_v29  ;;  %v710_v11 = vadd.f32 %v709_v8, %v686_v6  ;;  %v704_v7 = vmul.f32 %v1233_v62, %v1233_v62 }
  0xd7   : > { %v500_v12 = vpop.f32.mrf.mxu2 }
  0xd8   : > { %v711_v14 = vadd.f32 %v710_v11, %v687_v9  ;;  %v657_v15 = vadd.f32 %v656_v10, %v478_v36  ;;  %v1006_v16 = vpack.c.bf16 %v500_v12, %v498_v59  ;;  %v520_v17 = vpop.f32.mrf.mxu3  ;;  %v693_v36 = vmul.f32 %v1207_v31, %v1207_v31 }
  0xd9   : > { %v697_v53 = vmul.f32 %v500_v12, %v500_v12 }
  0xda   : > { %v658_v20 = vadd.f32 %v657_v15, %v480_v41  ;;  %v712_v21 = vadd.f32 %v711_v14, %v688_v13  ;;  %1030 = vst [vmem:[%s1203_s16 + $0x40] sm:$0xff] %v1006_v16   ;;  %v694_v41 = vmul.f32 %v1217_v37, %v1217_v37 }
  0xdc   : > { %v659_v23 = vadd.f32 %v658_v20, %v483_v52  ;;  %v713_v24 = vadd.f32 %v712_v21, %v689_v19 }
  0xde   : > { %v660_v27 = vadd.f32 %v659_v23, %v485_v4  ;;  %v714_v29 = vadd.f32 %v713_v24, %v690_v22 }
  0xdf   : > { %v503_v30 = vpop.f32.mrf.mxu2 }
  0xe0   : > { %v661_v34 = vadd.f32 %v660_v27, %v1194_v25  ;;  %v715_v35 = vadd.f32 %v714_v29, %v691_v28  ;;  %v698_v57 = vmul.f32 %v503_v30, %v503_v30 }
  0xe2   : > { %v662_v39 = vadd.f32 %v661_v34, %v1207_v31  ;;  %v716_v40 = vadd.f32 %v715_v35, %v692_v32 }
  0xe4   : > { %v663_v42 = vadd.f32 %v662_v39, %v1217_v37  ;;  %v717_v44 = vadd.f32 %v716_v40, %v693_v36 }
  0xe6   : > { %v718_v47 = vadd.f32 %v717_v44, %v694_v41  ;;  %v664_v25 = vadd.f32 %v663_v42, %v1223_v43 }
  0xe7   : > { %v505_v48 = vpop.f32.mrf.mxu2 }
  0xe8   : > { %v665_v50 = vadd.f32 %v664_v25, %v498_v59  ;;  %v719_v51 = vadd.f32 %v718_v47, %v695_v45  ;;  %v1011_v52 = vpack.c.bf16 %v505_v48, %v503_v30  ;;  %v699_v60 = vmul.f32 %v505_v48, %v505_v48 }
  0xe9   : > { %v701_v59 = vmul.f32 %v1211_v33, %v1211_v33 }
  0xea   : > { %v666_v31 = vadd.f32 %v665_v50, %v500_v12  ;;  %v720_v54 = vadd.f32 %v719_v51, %v696_v49  ;;  %1031 = vst [vmem:[%s1203_s16 + $0x48] sm:$0xff] %v1011_v52  }
  0xec   : > { %v721_v55 = vadd.f32 %v720_v54, %v697_v53  ;;  %v667_v56 = vadd.f32 %v666_v31, %v503_v30 }
  0xee   : > { %v722_v37 = vadd.f32 %v721_v55, %v698_v57  ;;  %v668_v58 = vadd.f32 %v667_v56, %v505_v48 }
  0xf0   : > { %v669_v43 = vadd.f32 %v668_v58, %v1196_v26  ;;  %v723_v63 = vadd.f32 %v722_v37, %v699_v60  ;;  %v703_v26 = vmul.f32 %v1227_v46, %v1227_v46 }
  0xf2   : > { %v670_v0 = vadd.f32 %v669_v43, %v1211_v33  ;;  %v724_v1 = vadd.f32 %v723_v63, %v700_v61 }
  0xf4   : > { %v725_v3 = vadd.f32 %v724_v1, %v701_v59  ;;  %v671_v4 = vadd.f32 %v670_v0, %v1219_v38 }
  0xf6   : > { %v672_v5 = vadd.f32 %v671_v4, %v1227_v46  ;;  %v726_v6 = vadd.f32 %v725_v3, %v702_v2 }
  0xf8   : > { %v727_v8 = vadd.f32 %v726_v6, %v703_v26  ;;  %v673_v33 = vadd.f32 %v672_v5, %v1233_v62 }
  0xfa   : > { %v674_v9 = vrot.slane %v673_v33, 4  ;;  %v728_v10 = vadd.f32 %v727_v8, %v704_v7 }
  0xfc   : > { %v675_v11 = vadd.f32 %v674_v9, %v673_v33  ;;  %v729_v12 = vrot.slane %v728_v10, 4 }
  0xfe   : > { %v676_v13 = vrot.slane %v675_v11, 2  ;;  %v730_v14 = vadd.f32 %v729_v12, %v728_v10 }
 0x100   : > { %v677_v38 = vadd.f32 %v676_v13, %v675_v11  ;;  %v731_v15 = vrot.slane %v730_v14, 2 }
 0x102   : > { %v678_v16 = vrot.slane %v677_v38, 1  ;;  %v732_v17 = vadd.f32 %v731_v15, %v730_v14 }
 0x104   : > { %v733_v46 = vrot.slane %v732_v17, 1  ;;  %v679_v62 = vadd.f32 %v678_v16, %v677_v38 }
 0x106   : > { %v734_v18 = vadd.f32 %v733_v46, %v732_v17 }
 0x108   : > { %v736_v19 = vsel %vm735_vm0, %v679_v62, %v734_v18 }
 0x109   : > { %737 = vst [vmem:[%s229_s20] sm:$0x3] %v736_v19 }
 0x10a PF: > { %s14_s14 = sadd.s32 1, %s1104_s14   ;;  %s1287_s12 = smov %s1100_s13 }
 0x10b   : > { %p11_p6 = scmp.ge.s32.totalorder %s14_s14, 4   ;;  %s1288_s13 = smov %s1290_s15 }
 0x10d   :  { %13 = sbr.rel (!%p11_p6) target bundleno = 2 (0x2), region = 81 }

// kernel: _lambda_.7
= control target key start
LH: loop header
LB: loop body
LE: loop exit
PB: predicated region body
PF: predicated region fallthrough
CT: control target
= control target key end

     0   :  { %s508_s12 = smov 0   ;;  %s549_s0 = inlined_call_operand.vmem [shape: bf16[288,128], index: 0, kind: input, shape index: {}, may-alias: {0,3}]   ;;  %s550_s1 = inlined_call_operand.vmem [shape: f32[1,128], index: 1, kind: input, shape index: {}]   ;;  %s551_s2 = inlined_call_operand.vmem [shape: f32[1,128], index: 2, kind: input, shape index: {}]   ;;  %s552_s3 = inlined_call_operand.vmem [shape: bf16[288,128], index: 3, kind: output, shape index: {}, may-alias: {0,3}]  }
   0x1 LB: > { %s364_s13 = sadd.s32 4294967295, %s486_s12   ;;  %p368_p0 = scmp.ge.s32.totalorder %s486_s12, 1  ;;  %s486_s12 = sphi %s508_s12, %s13_s12  }
   0x2   : > { %p138_p1 = scmp.lt.s32.totalorder %s486_s12, 3 }
   0x4   : > { %p139_p2 = pnand %p368_p0, %p138_p1 }
   0x5   : > { %s162_s14 = smul.u32 (!%p139_p2), 18, %s364_s13 }
   0x6   : > { %142 = sbr.rel (%p139_p2) target bundleno = 40 (0x28), region = 32 }
   0x7   : > { %p163_p3 = scmp.lt.s32.totalorder (!%p139_p2), %s162_s14, 35 }
   0xb   : > { %s554_s14 = smov (!%p163_p3, %s162_s14), 35  ;;  %v478_v0 = vld [vmem:[%s550_s1] ss:$0 sm:$0xff] }
   0xc   : > { %s369_s15 = sshll.u32 %s554_s14, 2  ;;  %v479_v34 = vld [vmem:[%s551_s2] ss:$0 sm:$0xff] }
   0xd   : > { %s166_s18 = scalar_lea.vmem %s549_s0, %s369_s15  ;;  %s535_s25 = scalar_lea.vmem %s552_s3, %s369_s15 }
   0xe   : > { %v374_v1 = vld [vmem:[%s166_s18] sm:$0xff]   ;;  %v454_v2 = vld [vmem:[%s166_s18 + $0x8] sm:$0xff]   ;;  %v455_v3 = vld [vmem:[%s166_s18 + $0x10] sm:$0xff]  }
   0xf   : > { %v375_v4 = vunpack.c.l.bf16 %v374_v1  ;;  %v376_v5 = vunpack.c.h.bf16 %v374_v1  ;;  %v379_v6 = vunpack.c.l.bf16 %v454_v2  ;;  %v380_v7 = vunpack.c.h.bf16 %v454_v2  ;;  %v456_v8 = vld [vmem:[%s166_s18 + $0x18] sm:$0xff]   ;;  %v457_v9 = vld [vmem:[%s166_s18 + $0x20] sm:$0xff]   ;;  %v458_v10 = vld [vmem:[%s166_s18 + $0x28] sm:$0xff]  }
  0x10   : > { %v383_v11 = vunpack.c.l.bf16 %v455_v3  ;;  %v384_v12 = vunpack.c.h.bf16 %v455_v3  ;;  %v387_v13 = vunpack.c.l.bf16 %v456_v8  ;;  %v388_v14 = vunpack.c.h.bf16 %v456_v8  ;;  %v459_v15 = vld [vmem:[%s166_s18 + $0x30] sm:$0xff]   ;;  %v460_v16 = vld [vmem:[%s166_s18 + $0x38] sm:$0xff]   ;;  %v461_v17 = vld [vmem:[%s166_s18 + $0x40] sm:$0xff]  }
  0x11   : > { %v391_v18 = vunpack.c.l.bf16 %v457_v9  ;;  %v392_v19 = vunpack.c.h.bf16 %v457_v9  ;;  %v395_v20 = vunpack.c.l.bf16 %v458_v10  ;;  %v396_v21 = vunpack.c.h.bf16 %v458_v10 }
  0x12   : > { %v399_v22 = vunpack.c.l.bf16 %v459_v15  ;;  %v400_v23 = vunpack.c.h.bf16 %v459_v15  ;;  %v403_v24 = vunpack.c.l.bf16 %v460_v16  ;;  %v404_v25 = vunpack.c.h.bf16 %v460_v16 }
  0x13   : > { %v407_v26 = vunpack.c.l.bf16 %v461_v17  ;;  %v408_v27 = vunpack.c.h.bf16 %v461_v17  ;;  %v214_v28 = vmul.f32 %v478_v0, %v375_v4  ;;  %v215_v29 = vmul.f32 %v478_v0, %v376_v5 }
  0x14   : > { %v216_v30 = vmul.f32 %v478_v0, %v379_v6  ;;  %v217_v31 = vmul.f32 %v478_v0, %v380_v7  ;;  %v218_v32 = vmul.f32 %v478_v0, %v383_v11  ;;  %v219_v33 = vmul.f32 %v478_v0, %v384_v12 }
  0x15   : > { %v220_v35 = vmul.f32 %v478_v0, %v387_v13  ;;  %v221_v36 = vmul.f32 %v478_v0, %v388_v14  ;;  %v222_v37 = vmul.f32 %v478_v0, %v391_v18  ;;  %v223_v38 = vmul.f32 %v478_v0, %v392_v19 }
  0x16   : > { %v224_v39 = vmul.f32 %v478_v0, %v395_v20  ;;  %v225_v40 = vmul.f32 %v478_v0, %v396_v21  ;;  %v226_v41 = vmul.f32 %v478_v0, %v399_v22  ;;  %v227_v42 = vmul.f32 %v478_v0, %v400_v23 }
  0x17   : > { %v228_v43 = vmul.f32 %v478_v0, %v403_v24  ;;  %v229_v44 = vmul.f32 %v478_v0, %v404_v25  ;;  %v230_v45 = vmul.f32 %v478_v0, %v407_v26  ;;  %v231_v46 = vmul.f32 %v478_v0, %v408_v27 }
  0x18   : > { %v236_v47 = vadd.f32 %v479_v34, %v214_v28  ;;  %v237_v48 = vadd.f32 %v479_v34, %v215_v29  ;;  %v238_v49 = vadd.f32 %v479_v34, %v216_v30  ;;  %v239_v50 = vadd.f32 %v479_v34, %v217_v31 }
  0x19   : > { %v240_v51 = vadd.f32 %v479_v34, %v218_v32  ;;  %v241_v52 = vadd.f32 %v479_v34, %v219_v33  ;;  %v242_v53 = vadd.f32 %v479_v34, %v220_v35  ;;  %v243_v54 = vadd.f32 %v479_v34, %v221_v36 }
  0x1a   : > { %v254_v55 = vmax.f32 %v236_v47, 0.0  ;;  %v255_v56 = vmax.f32 %v237_v48, 0.0  ;;  %v256_v57 = vmax.f32 %v238_v49, 0.0  ;;  %v257_v58 = vmax.f32 %v239_v50, 0.0 }
  0x1b   : > { %v258_v59 = vmax.f32 %v240_v51, 0.0  ;;  %v259_v60 = vmax.f32 %v241_v52, 0.0  ;;  %v260_v61 = vmax.f32 %v242_v53, 0.0  ;;  %v261_v62 = vmax.f32 %v243_v54, 0.0 }
  0x1c   : > { %v412_v63 = vpack.c.bf16 %v255_v56, %v254_v55  ;;  %v417_v0 = vpack.c.bf16 %v257_v58, %v256_v57  ;;  %v244_v1 = vadd.f32 %v479_v34, %v222_v37  ;;  %v245_v2 = vadd.f32 %v479_v34, %v223_v38 }
  0x1d   : > { %v422_v3 = vpack.c.bf16 %v259_v60, %v258_v59  ;;  %v427_v4 = vpack.c.bf16 %v261_v62, %v260_v61  ;;  %v246_v5 = vadd.f32 %v479_v34, %v224_v39  ;;  %v247_v6 = vadd.f32 %v479_v34, %v225_v40 }
  0x1e   : > { %413 = vst [vmem:[%s535_s25] sm:$0xff] %v412_v63   ;;  %v262_v7 = vmax.f32 %v244_v1, 0.0  ;;  %v263_v8 = vmax.f32 %v245_v2, 0.0  ;;  %v248_v9 = vadd.f32 %v479_v34, %v226_v41  ;;  %v249_v10 = vadd.f32 %v479_v34, %v227_v42 }
  0x1f   : > { %462 = vst [vmem:[%s535_s25 + $0x8] sm:$0xff] %v417_v0   ;;  %v264_v11 = vmax.f32 %v246_v5, 0.0  ;;  %v265_v12 = vmax.f32 %v247_v6, 0.0  ;;  %v250_v13 = vadd.f32 %v479_v34, %v228_v43  ;;  %v251_v14 = vadd.f32 %v479_v34, %v229_v44 }
  0x20   : > { %463 = vst [vmem:[%s535_s25 + $0x10] sm:$0xff] %v422_v3   ;;  %v432_v15 = vpack.c.bf16 %v263_v8, %v262_v7  ;;  %v266_v16 = vmax.f32 %v248_v9, 0.0  ;;  %v267_v17 = vmax.f32 %v249_v10, 0.0  ;;  %v252_v18 = vadd.f32 %v479_v34, %v230_v45 }
  0x21   : > { %464 = vst [vmem:[%s535_s25 + $0x18] sm:$0xff] %v427_v4   ;;  %v437_v19 = vpack.c.bf16 %v265_v12, %v264_v11  ;;  %v268_v20 = vmax.f32 %v250_v13, 0.0  ;;  %v269_v21 = vmax.f32 %v251_v14, 0.0  ;;  %v253_v22 = vadd.f32 %v479_v34, %v231_v46 }
  0x22   : > { %465 = vst [vmem:[%s535_s25 + $0x20] sm:$0xff] %v432_v15   ;;  %v442_v23 = vpack.c.bf16 %v267_v17, %v266_v16  ;;  %v270_v24 = vmax.f32 %v252_v18, 0.0 }
  0x23   : > { %466 = vst [vmem:[%s535_s25 + $0x28] sm:$0xff] %v437_v19   ;;  %v447_v25 = vpack.c.bf16 %v269_v21, %v268_v20  ;;  %v271_v26 = vmax.f32 %v253_v22, 0.0 }
  0x24   : > { %467 = vst [vmem:[%s535_s25 + $0x30] sm:$0xff] %v442_v23  }
  0x25   : > { %468 = vst [vmem:[%s535_s25 + $0x38] sm:$0xff] %v447_v25   ;;  %v452_v27 = vpack.c.bf16 %v271_v26, %v270_v24 }
  0x27   : > { %469 = vst [vmem:[%s535_s25 + $0x40] sm:$0xff] %v452_v27  }
  0x28 PF: > { %s13_s12 = sadd.s32 1, %s486_s12  }
  0x29   : > { %p10_p4 = scmp.ge.s32.totalorder %s13_s12, 4  }
  0x2b   :  { %12 = sbr.rel (!%p10_p4) target bundleno = 1 (0x1), region = 62 }

// kernel: _lambda_.6
= control target key start
LH: loop header
LB: loop body
LE: loop exit
PB: predicated region body
PF: predicated region fallthrough
CT: control target
= control target key end

     0   :  { %s975_s12 = smov 0   ;;  %s977_s13 = smov 0   ;;  %s1070_s0 = inlined_call_operand.vmem [shape: bf16[288,128], index: 0, kind: input, shape index: {}]   ;;  %s1071_s1 = inlined_call_operand.vmem [shape: bf16[128,128], index: 1, kind: input, shape index: {}]   ;;  %s1072_s2 = inlined_call_operand.vmem [shape: bf16[288,128], index: 2, kind: output, shape index: {0}]   ;;  %s1073_s3 = inlined_call_operand.vmem [shape: f32[2,2,128], index: 3, kind: output, shape index: {1}]  }
   0x1   :  { %s979_s14 = smov 0  }
   0x2 LB: > { %s26_s15 = sadd.s32 1, %s949_s13  ;;  %p739_p0 = scmp.ge.s32.totalorder %s953_s14, 1  ;;  %s953_s14 = sphi %s979_s14, %s14_s14   ;;  %s949_s13 = sphi %s977_s13, %s1075_s13   ;;  %s945_s12 = sphi %s975_s12, %s1074_s12  }
   0x3   : > { %p28_p1 = scmp.ge.s32.totalorder %s26_s15, 2  ;;  %p169_p2 = scmp.lt.s32.totalorder %s953_s14, 3 }
   0x5   : > { %s1077_s15 = smov (%p28_p1, %s26_s15), 0  ;;  %p170_p3 = pnand %p739_p0, %p169_p2 }
   0x6   : > { %s205_s24 = smul.u32 (!%p170_p3), 18, %s945_s12  ;;  %p226_p5 = scmp.lt.s32.totalorder (!%p170_p3), %s945_s12, 1 }
   0x7   : > { %173 = sbr.rel (%p170_p3) target bundleno = 242 (0xf2), region = 28 }
   0x8   : > { %p206_p4 = scmp.lt.s32.totalorder (!%p170_p3), %s205_s24, 35 }
   0xc   : > { %v829_v0 = vld [vmem:[%s1071_s1 + $0x38] sm:$0xff]  ;;  %v828_v1 = vld [vmem:[%s1071_s1 + $0x30] sm:$0xff]  ;;  %v827_v2 = vld [vmem:[%s1071_s1 + $0x28] sm:$0xff]  ;;  %s1079_s24 = smov (!%p206_p4, %s205_s24), 35  ;;  %s1081_s12 = smov (!%p226_p5, %s945_s12), 1  ;;  %vm617_vm0 = vcmask 1040384  }
   0xd   : > { %406 = vmatpush.bf16.msra.mxu0 %v829_v0  ;;  %884 = vmatpush.bf16.msra.mxu2 %v829_v0  ;;  %v826_v3 = vld [vmem:[%s1071_s1 + $0x20] sm:$0xff]  ;;  %v825_v4 = vld [vmem:[%s1071_s1 + $0x18] sm:$0xff]  ;;  %v824_v5 = vld [vmem:[%s1071_s1 + $0x10] sm:$0xff]  ;;  %s740_s4 = sshll.u32 %s1079_s24, 2  ;;  %s742_s17 = sshll.u32 %s1081_s12, 1 }
   0xe   : > { %883 = vmatpush.bf16.msra.mxu1 %v829_v0  ;;  %885 = vmatpush.bf16.msra.mxu3 %v829_v0  ;;  %v823_v6 = vld [vmem:[%s1071_s1 + $0x8] sm:$0xff]  ;;  %v822_v7 = vld [vmem:[%s1071_s1] sm:$0xff]  ;;  %s212_s9 = scalar_lea.vmem %s1070_s0, %s740_s4  ;;  %s1035_s16 = scalar_lea.vmem %s1072_s2, %s740_s4 }
   0xf   : > { %v813_v8 = vld [vmem:[%s212_s9] sm:$0xff]  ;;  %v815_v10 = vld [vmem:[%s212_s9 + $0x10] sm:$0xff]  ;;  %v820_v11 = vld [vmem:[%s212_s9 + $0x38] sm:$0xff]  ;;  %s229_s20 = scalar_lea.vmem %s1073_s3, %s742_s17 }
  0x10   : > { %v817_v9 = vld [vmem:[%s212_s9 + $0x20] sm:$0xff]  ;;  %v814_v12 = vld [vmem:[%s212_s9 + $0x8] sm:$0xff]  ;;  %v816_v14 = vld [vmem:[%s212_s9 + $0x18] sm:$0xff] }
  0x11   : > { %407 = vmatpush.bf16.msra.mxu0 %v828_v1  ;;  %887 = vmatpush.bf16.msra.mxu2 %v828_v1  ;;  %v818_v13 = vld [vmem:[%s212_s9 + $0x28] sm:$0xff]  ;;  %v821_v15 = vld [vmem:[%s212_s9 + $0x40] sm:$0xff]  ;;  %v819_v16 = vld [vmem:[%s212_s9 + $0x30] sm:$0xff] }
  0x12   : > { %886 = vmatpush.bf16.msra.mxu1 %v828_v1  ;;  %888 = vmatpush.bf16.msra.mxu3 %v828_v1 }
  0x15   : > { %408 = vmatpush.bf16.msra.mxu0 %v827_v2  ;;  %890 = vmatpush.bf16.msra.mxu2 %v827_v2 }
  0x16   : > { %889 = vmatpush.bf16.msra.mxu1 %v827_v2  ;;  %891 = vmatpush.bf16.msra.mxu3 %v827_v2 }
  0x19   : > { %409 = vmatpush.bf16.msra.mxu0 %v826_v3  ;;  %893 = vmatpush.bf16.msra.mxu2 %v826_v3 }
  0x1a   : > { %892 = vmatpush.bf16.msra.mxu1 %v826_v3  ;;  %894 = vmatpush.bf16.msra.mxu3 %v826_v3 }
  0x1d   : > { %410 = vmatpush.bf16.msra.mxu0 %v825_v4  ;;  %896 = vmatpush.bf16.msra.mxu2 %v825_v4 }
  0x1e   : > { %895 = vmatpush.bf16.msra.mxu1 %v825_v4  ;;  %897 = vmatpush.bf16.msra.mxu3 %v825_v4 }
  0x21   : > { %411 = vmatpush.bf16.msra.mxu0 %v824_v5  ;;  %899 = vmatpush.bf16.msra.mxu2 %v824_v5 }
  0x22   : > { %898 = vmatpush.bf16.msra.mxu1 %v824_v5  ;;  %900 = vmatpush.bf16.msra.mxu3 %v824_v5 }
  0x25   : > { %412 = vmatpush.bf16.msra.mxu0 %v823_v6  ;;  %902 = vmatpush.bf16.msra.mxu2 %v823_v6 }
  0x26   : > { %901 = vmatpush.bf16.msra.mxu1 %v823_v6  ;;  %903 = vmatpush.bf16.msra.mxu3 %v823_v6 }
  0x29   : > { %413 = vmatpush.bf16.msra.mxu0 %v822_v7  ;;  %905 = vmatpush.bf16.msra.mxu2 %v822_v7 }
  0x2a   : > { %904 = vmatpush.bf16.msra.mxu1 %v822_v7  ;;  %906 = vmatpush.bf16.msra.mxu3 %v822_v7 }
  0x2c   : > { %414 = vmatmul.bf16.vlgmr.msra.gmra.mxu0 %v813_v8  ;;  %434 = vmatmul.bf16.vlgmr.msra.gmra.mxu2 %v817_v9 }
  0x2d   : > { %424 = vmatmul.bf16.vlgmr.msra.gmra.mxu1 %v815_v10  ;;  %449 = vmatmul.bf16.vlgmr.msra.gmra.mxu3 %v820_v11 }
  0x3c   : > { %419 = vmatmul.bf16.gmra.mxu0 %v814_v12  ;;  %439 = vmatmul.bf16.gmra.mxu2 %v818_v13 }
  0x3d   : > { %429 = vmatmul.bf16.gmra.mxu1 %v816_v14  ;;  %454 = vmatmul.bf16.gmra.mxu3 %v821_v15 }
  0x4c   : > { %444 = vmatmul.bf16.gmra.mxu2 %v819_v16 }
  0xa9   : > { %v415_v17 = vpop.f32.mrf.mxu0 }
  0xaa   : > { %v425_v18 = vpop.f32.mrf.mxu1  ;;  %v576_v32 = vmul.f32 %v415_v17, %v415_v17 }
  0xab   : > { %v580_v46 = vmul.f32 %v425_v18, %v425_v18 }
  0xaf   : > { %v435_v19 = vpop.f32.mrf.mxu2 }
  0xb0   : > { %v1028_v20 = vpop.f32.mrf.mxu3  ;;  %v584_v62 = vmul.f32 %v435_v19, %v435_v19 }
  0xb1   : > { %v417_v21 = vpop.f32.mrf.mxu0 }
  0xb2   : > { %v833_v22 = vpack.c.bf16 %v417_v21, %v415_v17  ;;  %v427_v23 = vpop.f32.mrf.mxu1  ;;  %v577_v31 = vmul.f32 %v417_v21, %v417_v21  ;;  %v553_v33 = vadd.f32 %v417_v21, %v415_v17 }
  0xb3   : > { %v843_v24 = vpack.c.bf16 %v427_v23, %v425_v18  ;;  %v581_v49 = vmul.f32 %v427_v23, %v427_v23 }
  0xb4   : > { %834 = vst [vmem:[%s1035_s16] sm:$0xff] %v833_v22   ;;  %v594_v36 = vadd.f32 %v577_v31, %v576_v32 }
  0xb5   : > { %876 = vst [vmem:[%s1035_s16 + $0x10] sm:$0xff] %v843_v24  }
  0xb7   : > { %v437_v25 = vpop.f32.mrf.mxu2 }
  0xb8   : > { %v853_v26 = vpack.c.bf16 %v437_v25, %v435_v19  ;;  %v1039_v27 = vpop.f32.mrf.mxu3  ;;  %v585_v1 = vmul.f32 %v437_v25, %v437_v25 }
  0xb9   : > { %v420_v28 = vpop.f32.mrf.mxu0  ;;  %v868_v29 = vpack.c.bf16 %v1039_v27, %v1028_v20 }
  0xba   : > { %878 = vst [vmem:[%s1035_s16 + $0x20] sm:$0xff] %v853_v26   ;;  %v430_v30 = vpop.f32.mrf.mxu1  ;;  %v578_v34 = vmul.f32 %v420_v28, %v420_v28  ;;  %v554_v37 = vadd.f32 %v553_v33, %v420_v28 }
  0xbb   : > { %881 = vst [vmem:[%s1035_s16 + $0x38] sm:$0xff] %v868_v29   ;;  %v582_v53 = vmul.f32 %v430_v30, %v430_v30 }
  0xbc   : > { %v595_v40 = vadd.f32 %v594_v36, %v578_v34 }
  0xbf   : > { %v440_v35 = vpop.f32.mrf.mxu2 }
  0xc0   : > { %v455_v38 = vpop.f32.mrf.mxu3  ;;  %v586_v5 = vmul.f32 %v440_v35, %v440_v35 }
  0xc1   : > { %v422_v39 = vpop.f32.mrf.mxu0  ;;  %v592_v26 = vmul.f32 %v455_v38, %v455_v38 }
  0xc2   : > { %v838_v41 = vpack.c.bf16 %v422_v39, %v420_v28  ;;  %v555_v42 = vadd.f32 %v554_v37, %v422_v39  ;;  %v579_v43 = vmul.f32 %v422_v39, %v422_v39  ;;  %v432_v44 = vpop.f32.mrf.mxu1 }
  0xc3   : > { %v848_v45 = vpack.c.bf16 %v432_v44, %v430_v30  ;;  %v583_v60 = vmul.f32 %v432_v44, %v432_v44 }
  0xc4   : > { %875 = vst [vmem:[%s1035_s16 + $0x8] sm:$0xff] %v838_v41   ;;  %v556_v47 = vadd.f32 %v555_v42, %v425_v18  ;;  %v596_v48 = vadd.f32 %v595_v40, %v579_v43 }
  0xc5   : > { %877 = vst [vmem:[%s1035_s16 + $0x18] sm:$0xff] %v848_v45  }
  0xc6   : > { %v597_v50 = vadd.f32 %v596_v48, %v580_v46  ;;  %v557_v51 = vadd.f32 %v556_v47, %v427_v23  ;;  %v591_v23 = vmul.f32 %v1039_v27, %v1039_v27 }
  0xc7   : > { %v442_v52 = vpop.f32.mrf.mxu2 }
  0xc8   : > { %v558_v54 = vadd.f32 %v557_v51, %v430_v30  ;;  %v598_v55 = vadd.f32 %v597_v50, %v581_v49  ;;  %v858_v56 = vpack.c.bf16 %v442_v52, %v440_v35  ;;  %v457_v57 = vpop.f32.mrf.mxu3  ;;  %v587_v9 = vmul.f32 %v442_v52, %v442_v52 }
  0xc9   : > { %v873_v58 = vpack.c.bf16 %v457_v57, %v455_v38  ;;  %v593_v31 = vmul.f32 %v457_v57, %v457_v57 }
  0xca   : > { %v559_v59 = vadd.f32 %v558_v54, %v432_v44  ;;  %v599_v61 = vadd.f32 %v598_v55, %v582_v53  ;;  %879 = vst [vmem:[%s1035_s16 + $0x28] sm:$0xff] %v858_v56  }
  0xcb   : > { %882 = vst [vmem:[%s1035_s16 + $0x40] sm:$0xff] %v873_v58  }
  0xcc   : > { %v560_v63 = vadd.f32 %v559_v59, %v435_v19  ;;  %v600_v0 = vadd.f32 %v599_v61, %v583_v60  ;;  %v590_v19 = vmul.f32 %v1028_v20, %v1028_v20 }
  0xce   : > { %v561_v2 = vadd.f32 %v560_v63, %v437_v25  ;;  %v601_v3 = vadd.f32 %v600_v0, %v584_v62 }
  0xcf   : > { %v445_v4 = vpop.f32.mrf.mxu2 }
  0xd0   : > { %v602_v6 = vadd.f32 %v601_v3, %v585_v1  ;;  %v562_v7 = vadd.f32 %v561_v2, %v440_v35  ;;  %v588_v13 = vmul.f32 %v445_v4, %v445_v4 }
  0xd2   : > { %v563_v8 = vadd.f32 %v562_v7, %v442_v52  ;;  %v603_v10 = vadd.f32 %v602_v6, %v586_v5 }
  0xd4   : > { %v604_v11 = vadd.f32 %v603_v10, %v587_v9  ;;  %v564_v12 = vadd.f32 %v563_v8, %v445_v4 }
  0xd6   : > { %v605_v15 = vadd.f32 %v604_v11, %v588_v13 }
  0xd7   : > { %v447_v14 = vpop.f32.mrf.mxu2 }
  0xd8   : > { %v863_v16 = vpack.c.bf16 %v447_v14, %v445_v4  ;;  %v565_v17 = vadd.f32 %v564_v12, %v447_v14  ;;  %v589_v18 = vmul.f32 %v447_v14, %v447_v14 }
  0xda   : > { %880 = vst [vmem:[%s1035_s16 + $0x30] sm:$0xff] %v863_v16   ;;  %v566_v21 = vadd.f32 %v565_v17, %v1028_v20  ;;  %v606_v22 = vadd.f32 %v605_v15, %v589_v18 }
  0xdc   : > { %v607_v24 = vadd.f32 %v606_v22, %v590_v19  ;;  %v567_v25 = vadd.f32 %v566_v21, %v1039_v27 }
  0xde   : > { %v568_v28 = vadd.f32 %v567_v25, %v455_v38  ;;  %v608_v29 = vadd.f32 %v607_v24, %v591_v23 }
  0xe0   : > { %v569_v30 = vadd.f32 %v568_v28, %v457_v57  ;;  %v609_v32 = vadd.f32 %v608_v29, %v592_v26 }
  0xe2   : > { %v570_v33 = vrot.slane %v569_v30, 4  ;;  %v610_v34 = vadd.f32 %v609_v32, %v593_v31 }
  0xe4   : > { %v571_v35 = vadd.f32 %v570_v33, %v569_v30  ;;  %v611_v36 = vrot.slane %v610_v34, 4 }
  0xe6   : > { %v572_v20 = vrot.slane %v571_v35, 2  ;;  %v612_v37 = vadd.f32 %v611_v36, %v610_v34 }
  0xe8   : > { %v573_v39 = vadd.f32 %v572_v20, %v571_v35  ;;  %v613_v40 = vrot.slane %v612_v37, 2 }
  0xea   : > { %v574_v41 = vrot.slane %v573_v39, 1  ;;  %v614_v42 = vadd.f32 %v613_v40, %v612_v37 }
  0xec   : > { %v615_v27 = vrot.slane %v614_v42, 1  ;;  %v575_v38 = vadd.f32 %v574_v41, %v573_v39 }
  0xee   : > { %v616_v43 = vadd.f32 %v615_v27, %v614_v42 }
  0xf0   : > { %v618_v44 = vsel %vm617_vm0, %v575_v38, %v616_v43 }
  0xf1   : > { %619 = vst [vmem:[%s229_s20] sm:$0x3] %v618_v44 }
  0xf2 PF: > { %s14_s14 = sadd.s32 1, %s953_s14   ;;  %s1074_s12 = smov %s949_s13 }
  0xf3   : > { %p11_p6 = scmp.ge.s32.totalorder %s14_s14, 4   ;;  %s1075_s13 = smov %s1077_s15 }
  0xf5   :  { %13 = sbr.rel (!%p11_p6) target bundleno = 2 (0x2), region = 81 }

</bundles_post_ra>
